<compile_context>
chip_gen: v5e
topology: v5e:2x2
jax: 0.10.0
libtpu: 0.0.40
codegen_flags: <defaults>
</compile_context>

<pallas_src>
import jax
import jax.numpy as jnp
from jax.experimental import pallas as pl
from jax.experimental.pallas import tpu as pltpu

_INV_1P1 = float(1.0 / 1.1)  # constant multiply instead of f32 divide


def _swish_kernel(beta_ref, x_ref, y_ref, j_ref):
    beta = beta_ref[0]                    # scalar parameter from SMEM
    x = x_ref[...]
    z = jax.nn.sigmoid(beta * x)          # sigmoid(beta * x)
    y = x * z                             # x * sigmoid(beta * x)
    by = beta * y
    j = by + z * (1.0 - by)               # d/dx of (x * sigmoid(beta x))
    y_ref[...] = y * _INV_1P1
    j_ref[...] = j * _INV_1P1


def swish_forward(x, beta, *, tile_bytes=1 << 20):
    """x: (N, C, H, W) float32; beta: (1,) float32.
    Returns (y/1.1, jacobian_diag/1.1), both shaped like x."""
    orig_shape = x.shape
    total = x.size
    itemsize = jnp.dtype(x.dtype).itemsize

    # Widest lane dim (multiple of 128) that divides the element count; only
    # pad in the rare case nothing divides (avoids an extra HBM pass).
    lane = None
    for cand in (1024, 512, 256, 128):
        if total % cand == 0:
            lane = cand
            break
    pad = 0
    if lane is None:
        lane = 128
        pad = (-total) % lane

    x_flat = x.reshape(-1)
    if pad:
        x_flat = jnp.pad(x_flat, (0, pad))
    rows = x_flat.size // lane
    x2d = x_flat.reshape(rows, lane)

    # Tile the row axis: target ~tile_bytes per buffer, rows multiple of 8.
    tr = max(8, (tile_bytes // (lane * itemsize)) // 8 * 8)
    if tr >= rows:
        tr = rows  # single block equal to full array dims (always legal)
    grid = (pl.cdiv(rows, tr),)

    # TODO(synk): if j is only ever consumed by a backward pass, a custom_vjp
    # that recomputes it in bwd would cut HBM traffic ~33%; forward semantics
    # here require both outputs, so both are materialized.
    y2d, j2d = pl.pallas_call(
        _swish_kernel,
        out_shape=(
            jax.ShapeDtypeStruct((rows, lane), x.dtype),
            jax.ShapeDtypeStruct((rows, lane), x.dtype),
        ),
        grid=grid,
        in_specs=[
            pl.BlockSpec(memory_space=pltpu.SMEM),       # beta scalar
            pl.BlockSpec((tr, lane), lambda i: (i, 0)),  # tiled input rows
        ],
        out_specs=(
            pl.BlockSpec((tr, lane), lambda i: (i, 0)),
            pl.BlockSpec((tr, lane), lambda i: (i, 0)),
        ),
        compiler_params=pltpu.CompilerParams(
            dimension_semantics=("parallel",),
        ),
    )(beta, x2d)

    if pad:
        y = y2d.reshape(-1)[:total].reshape(orig_shape)
        j = j2d.reshape(-1)[:total].reshape(orig_shape)
    else:
        y = y2d.reshape(orig_shape)
        j = j2d.reshape(orig_shape)
    return y, j


if __name__ == "__main__":
    key = jax.random.PRNGKey(0)
    # NCHW, small shapes
    x = jax.random.normal(key, (2, 4, 16, 16), dtype=jnp.float32)
    # Deterministic parameter init, matching nn.Parameter(torch.Tensor([2.5]))
    beta = jnp.array([2.5], dtype=jnp.float32)

    y, j = swish_forward(x, beta)
    jax.block_until_ready((y, j))

    # Sanity check against a pure-JAX reference
    z_ref = jax.nn.sigmoid(beta[0] * x)
    y_ref = x * z_ref
    by_ref = beta[0] * y_ref
    j_ref = by_ref + z_ref * (1.0 - by_ref)
    assert jnp.allclose(y, y_ref / 1.1, atol=1e-6)
    assert jnp.allclose(j, j_ref / 1.1, atol=1e-6)

    print("KERNEL_OK")
</pallas_src>

<mosaic_0001>
module attributes {stable_mosaic.version = 11 : i64} {
  func.func @_swish_kernel(%arg0: i32, %arg1: memref<1xf32, #tpu.memory_space<smem>>, %arg2: memref<2x1024xf32, #tpu.memory_space<vmem>>, %arg3: memref<2x1024xf32, #tpu.memory_space<vmem>>, %arg4: memref<2x1024xf32, #tpu.memory_space<vmem>>) attributes {dimension_semantics = [#tpu.dimension_semantics<parallel>], iteration_bounds = array<i64: 1>, scalar_prefetch = 0 : i64, scratch_operands = 0 : i64, tpu.core_type = #tpu.core_type<tc>, window_params = [{transform_indices = @transform_0, window_bounds = array<i64: 1>}, {transform_indices = @transform_1, window_bounds = array<i64: 2, 1024>}, {transform_indices = @transform_2, window_bounds = array<i64: 2, 1024>}, {transform_indices = @transform_3, window_bounds = array<i64: 2, 1024>}]} {
    %c0 = arith.constant 0 : index
    %0 = memref.load %arg1[%c0] : memref<1xf32, #tpu.memory_space<smem>>
    %c0_0 = arith.constant 0 : index
    %c0_1 = arith.constant 0 : index
    %1 = vector.load %arg2[%c0_0, %c0_1] : memref<2x1024xf32, #tpu.memory_space<vmem>>, vector<2x1024xf32>
    %2 = vector.broadcast %0 : f32 to vector<2x1024xf32>
    %3 = arith.mulf %2, %1 : vector<2x1024xf32>
    %4 = arith.negf %3 : vector<2x1024xf32>
    %5 = math.exp %4 : vector<2x1024xf32>
    %cst = arith.constant 1.000000e+00 : f32
    %6 = vector.broadcast %cst : f32 to vector<2x1024xf32>
    %7 = arith.addf %6, %5 : vector<2x1024xf32>
    %8 = arith.divf %6, %7 : vector<2x1024xf32>
    %9 = arith.mulf %1, %8 : vector<2x1024xf32>
    %10 = vector.broadcast %0 : f32 to vector<2x1024xf32>
    %11 = arith.mulf %10, %9 : vector<2x1024xf32>
    %cst_2 = arith.constant 1.000000e+00 : f32
    %12 = vector.broadcast %cst_2 : f32 to vector<2x1024xf32>
    %13 = arith.subf %12, %11 : vector<2x1024xf32>
    %14 = arith.mulf %8, %13 : vector<2x1024xf32>
    %15 = arith.addf %11, %14 : vector<2x1024xf32>
    %cst_3 = arith.constant 0.909090936 : f32
    %16 = vector.broadcast %cst_3 : f32 to vector<2x1024xf32>
    %17 = arith.mulf %9, %16 : vector<2x1024xf32>
    %c0_4 = arith.constant 0 : index
    %c0_5 = arith.constant 0 : index
    %18 = vector.load %arg3[%c0_4, %c0_5] : memref<2x1024xf32, #tpu.memory_space<vmem>>, vector<2x1024xf32>
    tpu.vector_store %arg3[%c0_4, %c0_5], %17 {strides = array<i32>} : memref<2x1024xf32, #tpu.memory_space<vmem>>, vector<2x1024xf32>,
    %cst_6 = arith.constant 0.909090936 : f32
    %19 = vector.broadcast %cst_6 : f32 to vector<2x1024xf32>
    %20 = arith.mulf %15, %19 : vector<2x1024xf32>
    %c0_7 = arith.constant 0 : index
    %c0_8 = arith.constant 0 : index
    %21 = vector.load %arg4[%c0_7, %c0_8] : memref<2x1024xf32, #tpu.memory_space<vmem>>, vector<2x1024xf32>
    tpu.vector_store %arg4[%c0_7, %c0_8], %20 {strides = array<i32>} : memref<2x1024xf32, #tpu.memory_space<vmem>>, vector<2x1024xf32>,
    return
  }
  func.func @transform_0(%arg0: i32) -> i32 {
    %c0_i32 = arith.constant 0 : i32
    %c0_i32_0 = arith.constant 0 : i32
    return %c0_i32 : i32
  }
  func.func @transform_1(%arg0: i32) -> (i32, i32) {
    %c0_i32 = arith.constant 0 : i32
    %c0_i32_0 = arith.constant 0 : i32
    return %arg0, %c0_i32 : i32, i32
  }
  func.func @transform_2(%arg0: i32) -> (i32, i32) {
    %c0_i32 = arith.constant 0 : i32
    %c0_i32_0 = arith.constant 0 : i32
    return %arg0, %c0_i32 : i32, i32
  }
  func.func @transform_3(%arg0: i32) -> (i32, i32) {
    %c0_i32 = arith.constant 0 : i32
    %c0_i32_0 = arith.constant 0 : i32
    return %arg0, %c0_i32 : i32, i32
  }
}

</mosaic_0001>

<bundles_post_ra>
// kernel: tpu_custom_call.1
= control target key start
LH: loop header
LB: loop body
LE: loop exit
PB: predicated region body
PF: predicated region fallthrough
CT: control target
= control target key end

     0   :  { %10 = vsyncpa [#allocation4], 0  ;;  %s251_s0 = inlined_call_operand.<no memory space> [shape: f32[1], index: 0, kind: input, shape index: {}]   ;;  %s252_s1 = inlined_call_operand.hbm [shape: f32[2,1024], index: 1, kind: input, shape index: {}]   ;;  %s253_s2 = inlined_call_operand.hbm [shape: f32[2,1024], index: 2, kind: output, shape index: {0}]   ;;  %s254_s3 = inlined_call_operand.hbm [shape: f32[2,1024], index: 3, kind: output, shape index: {1}]  }
   0x1   :  { %11 = vsyncpa [#allocation5], 0 }
   0x2   :  { %12 = vsyncpa [#allocation8], 0  ;;  %s20_s14 = sshll.u32 %s252_s1, 4  ;;  %s216_s15 = smov [#allocation3]   ;;  %s21_s14 = int_to_ptr.hbm [resolvable:$true] %s20_s14 }
   0x3   :  { %s22_s16 = sshll.u32 %s216_s15, 4  ;;  %s23_s16 = int_to_ptr.vmem [resolvable:$true] %s22_s16 }
   0x4   :  { %25 = dma.hbm_to_vmem [thread:$0]  %s21_s14, 256, %s23_s16, [#allocation4]  }
   0x5   :  { %210 = dma.done.wait [#allocation4], 256  }
   0x6   :  { %211 = vsyncadd [#allocation4], 4294967040  ;;  %v33_v0 = vstv %s251_s0  ;;  %v31_v1 = vld [vmem:[#allocation3] sm:$0xff]  ;;  %v32_v2 = vld [vmem:[#allocation3 + $0x8] sm:$0xff]  ;;  %s217_s0 = smov [#allocation6]   ;;  %s99_s21 = sshll.u32 %s253_s2, 4  ;;  %s100_s21 = int_to_ptr.hbm [resolvable:$true] %s99_s21 }
   0x7   :  { %v34_v3 = vmul.f32 %v33_v0, %v31_v1  ;;  %v35_v4 = vmul.f32 %v33_v0, %v32_v2  ;;  %s97_s1 = sshll.u32 %s217_s0, 4  ;;  %s218_s22 = smov [#allocation7]   ;;  %s98_s1 = int_to_ptr.vmem [resolvable:$true] %s97_s1 }
   0x8   :  { %s108_s23 = sshll.u32 %s218_s22, 4  ;;  %s110_s2 = sshll.u32 %s254_s3, 4  ;;  %s109_s23 = int_to_ptr.vmem [resolvable:$true] %s108_s23  ;;  %s111_s2 = int_to_ptr.hbm [resolvable:$true] %s110_s2 }
   0x9   :  { %v125_v5 = vmul.f32 -1.442695, %v34_v3  ;;  %v126_v6 = vmul.f32 -1.442695, %v35_v4 }
   0xb   :  { %130 = vpow2.f32 %v125_v5 }
   0xc   :  { %132 = vpow2.f32 %v126_v6 }
  0x11   :  { %v131_v7 = vpop.eup %130 }
  0x12   :  { %v133_v8 = vpop.eup %132  ;;  %v42_v9 = vadd.f32 1.0, %v131_v7 }
  0x13   :  { %v43_v10 = vadd.f32 1.0, %v133_v8 }
  0x14   :  { %134 = vrcp.f32 %v42_v9  ;;  %vm49_vm0 = vweird.f32 %v42_v9  ;;  %v55_v14 = vand.u32 2147483648, %v42_v9  ;;  %v53_v17 = vand.u32 2147483647, %v42_v9 }
  0x15   :  { %136 = vrcp.f32 %v43_v10  ;;  %v70_v18 = vand.u32 2147483648, %v43_v10  ;;  %vm64_vm2 = vweird.f32 %v43_v10  ;;  %v68_v20 = vand.u32 2147483647, %v43_v10 }
  0x16   :  { %v56_v22 = vor.u32 1.1754944e-38, %v55_v14  ;;  %vm54_vm5 = vcmp.eq.f32.partialorder %v53_v17, 8.507059e+37 }
  0x17   :  { %v71_v25 = vor.u32 1.1754944e-38, %v70_v18  ;;  %vm69_vm7 = vcmp.eq.f32.partialorder %v68_v20, 8.507059e+37 }
  0x1a   :  { %v135_v11 = vpop.eup %134 }
  0x1b   :  { %v137_v12 = vpop.eup %136  ;;  %v45_v13 = vmul.f32 %v135_v11, %v42_v9  ;;  %vm50_vm1 = vweird.f32 %v135_v11 }
  0x1c   :  { %v60_v15 = vmul.f32 %v137_v12, %v43_v10  ;;  %vm65_vm3 = vweird.f32 %v137_v12  ;;  %vm51_vm4 = vmor %vm49_vm0, %vm50_vm1 }
  0x1d   :  { %v46_v16 = vsub.f32 1.0, %v45_v13  ;;  %vm66_vm6 = vmor %vm64_vm2, %vm65_vm3 }
  0x1e   :  { %v61_v19 = vsub.f32 1.0, %v60_v15 }
  0x1f   :  { %v47_v21 = vmul.f32 %v135_v11, %v46_v16 }
  0x20   :  { %v62_v23 = vmul.f32 %v137_v12, %v61_v19 }
  0x21   :  { %v48_v24 = vadd.f32 %v135_v11, %v47_v21 }
  0x22   :  { %v63_v26 = vadd.f32 %v137_v12, %v62_v23 }
  0x23   :  { %v52_v27 = vsel %vm51_vm4, %v135_v11, %v48_v24 }
  0x24   :  { %v57_v28 = vsel %vm54_vm5, %v56_v22, %v52_v27  ;;  %v67_v29 = vsel %vm66_vm6, %v137_v12, %v63_v26 }
  0x25   :  { %v74_v30 = vmul.f32 %v57_v28, %v31_v1  ;;  %v72_v31 = vsel %vm69_vm7, %v71_v25, %v67_v29 }
  0x26   :  { %v75_v32 = vmul.f32 %v72_v31, %v32_v2 }
  0x27   :  { %v84_v33 = vmul.f32 0.90909094, %v74_v30  ;;  %v76_v34 = vmul.f32 %v74_v30, %v33_v0 }
  0x28   :  { %v85_v35 = vmul.f32 0.90909094, %v75_v32  ;;  %v77_v36 = vmul.f32 %v75_v32, %v33_v0 }
  0x29   :  { %86 = vst [vmem:[#allocation6] sm:$0xff] %v84_v33  ;;  %v78_v37 = vsub.f32 1.0, %v76_v34 }
  0x2a   :  { %87 = vst [vmem:[#allocation6 + $0x8] sm:$0xff] %v85_v35  ;;  %v79_v38 = vsub.f32 1.0, %v77_v36 }
  0x2b   :  { %v80_v39 = vmul.f32 %v78_v37, %v57_v28  ;;  %102 = dma.vmem_to_hbm [thread:$0]  %s98_s1, 256, %s100_s21, [#allocation5]  }
  0x2c   :  { %v81_v40 = vmul.f32 %v79_v38, %v72_v31 }
  0x2d   :  { %v82_v41 = vadd.f32 %v80_v39, %v76_v34 }
  0x2e   :  { %v83_v42 = vadd.f32 %v81_v40, %v77_v36 }
  0x2f   :  { %v88_v43 = vmul.f32 0.90909094, %v82_v41 }
  0x30   :  { %v89_v44 = vmul.f32 0.90909094, %v83_v42 }
  0x31   :  { %90 = vst [vmem:[#allocation7] sm:$0xff] %v88_v43 }
  0x32   :  { %91 = vst [vmem:[#allocation7 + $0x8] sm:$0xff] %v89_v44 }
  0x33   :  { %113 = dma.vmem_to_hbm [thread:$0]  %s109_s23, 256, %s111_s2, [#allocation8]  }
  0x34   :  { %212 = dma.done.wait [#allocation5], 256  }
  0x35   :  { %213 = vsyncadd [#allocation5], 4294967040 }
  0x36   :  { %214 = dma.done.wait [#allocation8], 256  }
  0x37   :  { %215 = vsyncadd [#allocation8], 4294967040 }
  0x38   :  { %122 = vsyncpa [#allocation4], 1 }
  0x39   :  { %123 = vsyncpa [#allocation5], 1 }
  0x3a   :  { %124 = vsyncpa [#allocation8], 1 }

</bundles_post_ra>
